<compile_context>
chip_gen: v7x
topology: tpu7x:2x2x1
jax: 0.10.0
libtpu: 0.0.40
codegen_flags: <defaults>
</compile_context>

<pallas_src>
import jax
import jax.numpy as jnp
from jax.experimental import pallas as pl
from jax.experimental.pallas import tpu as pltpu

_LANE = 128                  # lane width: feature dims padded to multiples of this
_MAX_BATCH_TILE = 2048       # cap on batch-tile rows
_VMEM_HEADROOM = 2 << 20     # headroom for compiler-internal scratch
_FALLBACK_VMEM = 64 << 20    # v7x per-TC physical VMEM; safe on every generation


def _round_up(n, m):
    return ((n + m - 1) // m) * m


def _sublane(dtype):
    # Native second-minor tile rows: 8 for 4-byte, 16 for 2-byte, 32 for 1-byte.
    return max(8, 32 // jnp.dtype(dtype).itemsize)


def _pad_to(arr, shape):
    pads = [(0, t - s) for s, t in zip(arr.shape, shape)]
    if all(p == (0, 0) for p in pads):
        return arr               # no copy when already aligned
    return jnp.pad(arr, pads)


def _vmem_budget_bytes():
    """~80% of physical VMEM per TensorCore (per-generation)."""
    phys = _FALLBACK_VMEM
    try:
        cap = getattr(pltpu.get_tpu_info(), "vmem_capacity_bytes", None)
        if cap:
            phys = int(cap)
    except Exception:
        pass
    # ~102 MiB on v5e/v6e (128 MiB physical), ~51 MiB on v7x (64 MiB per TC).
    return int(phys * 0.8)


def _batch_tile_cap(budget, resident_bytes, d_in_p, h_p, d_out_p, itemsize,
                    sublane):
    """Largest batch tile whose pipeline buffers + intermediates fit VMEM
    after reserving the single-copy resident weights/biases."""
    avail = budget - resident_bytes - _VMEM_HEADROOM
    # Per batch-row cost: double-buffered x tile + double-buffered out tile
    # plus the f32 hidden/output intermediates.
    per_row = (2 * itemsize * d_in_p + 2 * itemsize * d_out_p
               + 4 * (h_p + d_out_p))
    cap = avail // max(per_row, 1)
    cap = min(max(cap, sublane), _MAX_BATCH_TILE)
    return (cap // sublane) * sublane


# ----------------------------- kernels ---------------------------------------

def _linear_kernel(x_ref, w_ref, b_ref, o_ref):
    # y = x @ w + b  (single nn.Linear), f32 accumulation on the MXU.
    y = jnp.dot(x_ref[...], w_ref[...], preferred_element_type=jnp.float32)
    o_ref[...] = (y + b_ref[...].astype(jnp.float32)).astype(o_ref.dtype)


def _mlp_kernel(x_ref, w1_ref, b1_ref, w2_ref, b2_ref, o_ref):
    # y = relu(x @ w1 + b1) @ w2 + b2, fused; f32 accumulation throughout.
    h = jnp.dot(x_ref[...], w1_ref[...], preferred_element_type=jnp.float32)
    h = jnp.maximum(h + b1_ref[...].astype(jnp.float32), 0.0)
    # Cast the activation DOWN to the weight dtype (native-dtype MXU matmul),
    # keep f32 accumulation via preferred_element_type.
    y = jnp.dot(h.astype(w2_ref.dtype), w2_ref[...],
                preferred_element_type=jnp.float32)
    o_ref[...] = (y + b2_ref[...].astype(jnp.float32)).astype(o_ref.dtype)


# ----------------------------- wrapper ----------------------------------------

def linear_probe_forward(x, params):
    """LinearProbe forward as a single fused, batch-tiled Pallas call.

    params: dict with 'w1' [D_in, H or D_out], 'b1' [1, ...], and optionally
            'w2' [H, D_out], 'b2' [1, D_out]  (weights pre-transposed to
            [in, out] so the kernel computes x @ W on the MXU).
    """
    B, D_in = x.shape
    dtype = x.dtype
    itemsize = jnp.dtype(dtype).itemsize
    sublane = _sublane(dtype)
    has_hidden = "w2" in params

    D_in_p = _round_up(D_in, _LANE)

    if has_hidden:
        w1, b1, w2, b2 = params["w1"], params["b1"], params["w2"], params["b2"]
        H, D_out = w2.shape
        H_p = _round_up(H, _LANE)
        D_out_p = _round_up(D_out, _LANE)
        resident = itemsize * (D_in_p * H_p + H_p + H_p * D_out_p + D_out_p)
    else:
        w1, b1 = params["w1"], params["b1"]
        D_out = w1.shape[1]
        H_p = 0
        D_out_p = _round_up(D_out, _LANE)
        resident = itemsize * (D_in_p * D_out_p + D_out_p)

    budget = _vmem_budget_bytes()

    # --- batch tiling --------------------------------------------------------
    B_p = _round_up(B, sublane)
    tb_cap = _batch_tile_cap(budget, resident, D_in_p, H_p, D_out_p, itemsize,
                             sublane)
    # Guarantee >= 2 grid steps (when the batch allows) so the "parallel" axis
    # shards across both TensorCores on v7x; one extra step is noise elsewhere.
    min_tiles = 2 if B_p >= 2 * sublane else 1
    num_tiles = max(pl.cdiv(B_p, tb_cap), min_tiles)
    tb = _round_up(pl.cdiv(B_p, num_tiles), sublane)
    grid_n = pl.cdiv(B_p, tb)
    B_pad = grid_n * tb            # padding bounded by ~grid_n*sublane rows

    x_p = _pad_to(x, (B_pad, D_in_p))     # no HBM copy when already aligned

    # x / out stream through a double-buffered pipeline; weights & biases are
    # single-copy VMEM residents (no blocking, no double-buffering).
    x_spec = pl.BlockSpec((tb, D_in_p), lambda i: (i, 0))
    out_spec = pl.BlockSpec((tb, D_out_p), lambda i: (i, 0))
    vmem_resident = pl.BlockSpec(memory_space=pltpu.MemorySpace.VMEM)

    compiler_params = pltpu.CompilerParams(
        dimension_semantics=("parallel",),
        vmem_limit_bytes=budget,
    )

    if has_hidden:
        w1_p = _pad_to(w1, (D_in_p, H_p))
        b1_p = _pad_to(b1, (1, H_p))
        w2_p = _pad_to(w2, (H_p, D_out_p))
        b2_p = _pad_to(b2, (1, D_out_p))
        flops = 2 * B_pad * D_in_p * H_p + 2 * B_pad * H_p * D_out_p
        bytes_accessed = itemsize * (
            B_pad * D_in_p + D_in_p * H_p + H_p + H_p * D_out_p + D_out_p
            + B_pad * D_out_p)
        out = pl.pallas_call(
            _mlp_kernel,
            out_shape=jax.ShapeDtypeStruct((B_pad, D_out_p), dtype),
            grid=(grid_n,),
            in_specs=[x_spec, vmem_resident, vmem_resident,
                      vmem_resident, vmem_resident],
            out_specs=out_spec,
            compiler_params=compiler_params,
            cost_estimate=pl.CostEstimate(flops=flops, transcendentals=0,
                                          bytes_accessed=bytes_accessed),
        )(x_p, w1_p, b1_p, w2_p, b2_p)
    else:
        w1_p = _pad_to(w1, (D_in_p, D_out_p))
        b1_p = _pad_to(b1, (1, D_out_p))
        flops = 2 * B_pad * D_in_p * D_out_p
        bytes_accessed = itemsize * (
            B_pad * D_in_p + D_in_p * D_out_p + D_out_p + B_pad * D_out_p)
        out = pl.pallas_call(
            _linear_kernel,
            out_shape=jax.ShapeDtypeStruct((B_pad, D_out_p), dtype),
            grid=(grid_n,),
            in_specs=[x_spec, vmem_resident, vmem_resident],
            out_specs=out_spec,
            compiler_params=compiler_params,
            cost_estimate=pl.CostEstimate(flops=flops, transcendentals=0,
                                          bytes_accessed=bytes_accessed),
        )(x_p, w1_p, b1_p)

    return out[:B, :D_out]


def init_linear_probe_params(key, input_dim, output_dim, hidden_dim=None,
                             dtype=jnp.float32):
    """Synthetic init mirroring nn.Linear shapes.

    PyTorch stores Linear weight as [out, in]; we store the transpose [in, out]
    so the kernel computes x @ W directly. Uniform(-1/sqrt(in), 1/sqrt(in))
    mimics PyTorch default init.
    """
    if hidden_dim is None:
        k1, k2 = jax.random.split(key, 2)
        bound = 1.0 / jnp.sqrt(input_dim)
        return {
            "w1": jax.random.uniform(k1, (input_dim, output_dim), dtype,
                                     -bound, bound),
            "b1": jax.random.uniform(k2, (1, output_dim), dtype, -bound, bound),
        }
    k1, k2, k3, k4 = jax.random.split(key, 4)
    bd1 = 1.0 / jnp.sqrt(input_dim)
    bd2 = 1.0 / jnp.sqrt(hidden_dim)
    return {
        "w1": jax.random.uniform(k1, (input_dim, hidden_dim), dtype, -bd1, bd1),
        "b1": jax.random.uniform(k2, (1, hidden_dim), dtype, -bd1, bd1),
        "w2": jax.random.uniform(k3, (hidden_dim, output_dim), dtype, -bd2, bd2),
        "b2": jax.random.uniform(k4, (1, output_dim), dtype, -bd2, bd2),
    }


# ------------------------------- main ------------------------------------------

if __name__ == "__main__":
    key = jax.random.PRNGKey(0)
    kx, kx2, kp1, kp2 = jax.random.split(key, 4)

    B, D_in, H, D_out = 8, 32, 16, 4
    x = jax.random.normal(kx, (B, D_in), jnp.float32)

    # Case 1: hidden_dim=None -> single Linear.
    p_lin = init_linear_probe_params(kp1, D_in, D_out, hidden_dim=None)
    y_lin = jax.block_until_ready(linear_probe_forward(x, p_lin))
    ref_lin = x @ p_lin["w1"] + p_lin["b1"]
    assert y_lin.shape == (B, D_out)
    assert jnp.allclose(y_lin, ref_lin, atol=1e-5, rtol=1e-5)

    # Case 2: hidden_dim given -> Linear-ReLU-Linear fused in one kernel.
    p_mlp = init_linear_probe_params(kp2, D_in, D_out, hidden_dim=H)
    y_mlp = jax.block_until_ready(linear_probe_forward(x, p_mlp))
    ref_mlp = (jnp.maximum(x @ p_mlp["w1"] + p_mlp["b1"], 0.0)
               @ p_mlp["w2"] + p_mlp["b2"])
    assert y_mlp.shape == (B, D_out)
    assert jnp.allclose(y_mlp, ref_mlp, atol=1e-5, rtol=1e-5)

    # Case 3: ragged batch -> exercises batch padding + the >=2-step grid
    # (v7x megacore) path.
    x3 = jax.random.normal(kx2, (12, D_in), jnp.float32)
    y3 = jax.block_until_ready(linear_probe_forward(x3, p_mlp))
    ref3 = (jnp.maximum(x3 @ p_mlp["w1"] + p_mlp["b1"], 0.0)
            @ p_mlp["w2"] + p_mlp["b2"])
    assert y3.shape == (12, D_out)
    assert jnp.allclose(y3, ref3, atol=1e-5, rtol=1e-5)

    # Case 4: bf16 -> exercises the dtype-dependent (16,128) tiling path and
    # the native-dtype MXU matmuls.
    p_bf = jax.tree_util.tree_map(lambda a: a.astype(jnp.bfloat16), p_mlp)
    x_bf = x.astype(jnp.bfloat16)
    y_bf = jax.block_until_ready(linear_probe_forward(x_bf, p_bf))
    f32 = jnp.float32
    h_ref = jnp.maximum(x_bf.astype(f32) @ p_bf["w1"].astype(f32)
                        + p_bf["b1"].astype(f32), 0.0)
    h_ref = h_ref.astype(jnp.bfloat16).astype(f32)  # kernel casts h to w2 dtype
    ref_bf = (h_ref @ p_bf["w2"].astype(f32)
              + p_bf["b2"].astype(f32)).astype(jnp.bfloat16)
    assert y_bf.shape == (B, D_out)
    assert jnp.allclose(y_bf.astype(f32), ref_bf.astype(f32),
                        atol=1e-2, rtol=1e-2)

    print("KERNEL_OK")
</pallas_src>

<mosaic_0001>
module attributes {stable_mosaic.version = 11 : i64} {
  func.func @_linear_kernel(%arg0: i32, %arg1: memref<8x128xf32, #tpu.memory_space<vmem>>, %arg2: memref<128x128xf32, #tpu.memory_space<vmem>>, %arg3: memref<1x128xf32, #tpu.memory_space<vmem>>, %arg4: memref<8x128xf32, #tpu.memory_space<vmem>>) attributes {dimension_semantics = [#tpu.dimension_semantics<parallel>], iteration_bounds = array<i64: 1>, scalar_prefetch = 0 : i64, scratch_operands = 0 : i64, tpu.core_type = #tpu.core_type<tc>, window_params = [{transform_indices = @transform_0, window_bounds = array<i64: 8, 128>}, {pipeline_mode = #tpu.pipeline_mode<synchronous>, transform_indices = @transform_1, window_bounds = array<i64: 128, 128>}, {pipeline_mode = #tpu.pipeline_mode<synchronous>, transform_indices = @transform_2, window_bounds = array<i64: 1, 128>}, {transform_indices = @transform_3, window_bounds = array<i64: 8, 128>}]} {
    %c0 = arith.constant 0 : index
    %c0_0 = arith.constant 0 : index
    %0 = vector.load %arg1[%c0, %c0_0] : memref<8x128xf32, #tpu.memory_space<vmem>>, vector<8x128xf32>
    %c0_1 = arith.constant 0 : index
    %c0_2 = arith.constant 0 : index
    %1 = vector.load %arg2[%c0_1, %c0_2] : memref<128x128xf32, #tpu.memory_space<vmem>>, vector<128x128xf32>
    %cst = arith.constant dense<0.000000e+00> : vector<8x128xf32>
    %2 = tpu.matmul %0, %1, %cst {dimension_numbers = #tpu.dot_dimension_numbers<[1], [0], [0], [1], [0, 0, 1, 1], [], []>} : vector<8x128xf32>, vector<128x128xf32>, vector<8x128xf32> -> vector<8x128xf32>
    %c0_3 = arith.constant 0 : index
    %c0_4 = arith.constant 0 : index
    %3 = vector.load %arg3[%c0_3, %c0_4] : memref<1x128xf32, #tpu.memory_space<vmem>>, vector<1x128xf32>
    %4 = vector.broadcast %3 : vector<1x128xf32> to vector<8x128xf32>
    %5 = arith.addf %2, %4 : vector<8x128xf32>
    %c0_5 = arith.constant 0 : index
    %c0_6 = arith.constant 0 : index
    %6 = vector.load %arg4[%c0_5, %c0_6] : memref<8x128xf32, #tpu.memory_space<vmem>>, vector<8x128xf32>
    tpu.vector_store %arg4[%c0_5, %c0_6], %5 {strides = array<i32>} : memref<8x128xf32, #tpu.memory_space<vmem>>, vector<8x128xf32>,
    return
  }
  func.func @transform_0(%arg0: i32) -> (i32, i32) {
    %c0_i32 = arith.constant 0 : i32
    %c0_i32_0 = arith.constant 0 : i32
    return %arg0, %c0_i32 : i32, i32
  }
  func.func @transform_1(%arg0: i32) -> (i32, i32) {
    %c0_i32 = arith.constant 0 : i32
    %c0_i32_0 = arith.constant 0 : i32
    %c0_i32_1 = arith.constant 0 : i32
    return %c0_i32, %c0_i32_0 : i32, i32
  }
  func.func @transform_2(%arg0: i32) -> (i32, i32) {
    %c0_i32 = arith.constant 0 : i32
    %c0_i32_0 = arith.constant 0 : i32
    %c0_i32_1 = arith.constant 0 : i32
    return %c0_i32, %c0_i32_0 : i32, i32
  }
  func.func @transform_3(%arg0: i32) -> (i32, i32) {
    %c0_i32 = arith.constant 0 : i32
    %c0_i32_0 = arith.constant 0 : i32
    return %arg0, %c0_i32 : i32, i32
  }
}

</mosaic_0001>

<bundles_post_ra>
// kernel: tpu_custom_call.1
= control target key start
LH: loop header
LB: loop body
LE: loop exit
PB: predicated region body
PF: predicated region fallthrough
CT: control target
= control target key end

     0   :  { %8 = vsyncpa [#allocation3], 0  ;;  %s383_s0 = inlined_call_operand.hbm [shape: f32[8,128], index: 0, kind: input, shape index: {}]   ;;  %s384_s1 = inlined_call_operand.hbm [shape: f32[128,128], index: 1, kind: input, shape index: {}]   ;;  %s385_s2 = inlined_call_operand.vmem [shape: f32[1,128], index: 2, kind: input, shape index: {}]   ;;  %s386_s3 = inlined_call_operand.hbm [shape: f32[8,128], index: 3, kind: output, shape index: {}]  }
   0x1   :  { %9 = vsyncpa [#allocation6], 0 }
   0x2   :  { %10 = vsyncpa [#allocation4], 0  ;;  %s309_s12 = smov [#allocation2]   ;;  %s310_s14 = smov [#allocation5]  }
   0x3   :  { %s17_s13 = sshll.u32 %s309_s12, 4  ;;  %s26_s15 = sshll.u32 %s310_s14, 4  ;;  %s18_s13 = int_to_ptr.vmem [resolvable:$true] %s17_s13  ;;  %s337_s15 = int_to_ptr.vmem [resolvable:$true] %s26_s15 }
   0x4   :  { %s237_s18 = scalar_lea.hbm %s383_s0, 128 }
   0x5   :  { %p238_p0 = scmp.ne.s32.totalorder %s383_s0, %s237_s18  ;;  %p241_p1 = scmp.lt.u32.totalorder %s237_s18, %s383_s0 }
   0x7   :  { %p243_p2 = pnand %p241_p1, %p238_p0 }
   0x9   :  { %246 = shalt.err (!%p243_p2)
}
   0xa   :  { %s247_s23 = scalar_lea.vmem %s18_s13, 128  ;;  %p252_p4 = scmp.lt.s32.totalorder %s18_s13, %s18_s13 }
   0xb   :  { %p248_p3 = scmp.ne.s32.totalorder %s18_s13, %s247_s23  ;;  %p253_p5 = scmp.lt.s32.totalorder %s247_s23, %s247_s23 }
   0xd   :  { %p254_p6 = por %p253_p5, %p252_p4 }
   0xf   :  { %p255_p7 = pnand %p254_p6, %p248_p3 }
  0x11   :  { %258 = shalt.err (!%p255_p7)
}
  0x12   :  { %20 = dma.hbm_to_vmem [thread:$0]  %s383_s0, 128, %s18_s13, [#allocation3]  }
  0x13   :  { %s259_s28 = scalar_lea.hbm %s384_s1, 2048 }
  0x14   :  { %p260_p8 = scmp.ne.s32.totalorder %s384_s1, %s259_s28  ;;  %p263_p9 = scmp.lt.u32.totalorder %s259_s28, %s384_s1 }
  0x16   :  { %p265_p10 = pnand %p263_p9, %p260_p8 }
  0x18   :  { %268 = shalt.err (!%p265_p10)
}
  0x19   :  { %s269_s6 = scalar_lea.vmem %s337_s15, 2048  ;;  %p274_p12 = scmp.lt.s32.totalorder %s337_s15, %s337_s15 }
  0x1a   :  { %p270_p11 = scmp.ne.s32.totalorder %s337_s15, %s269_s6  ;;  %p275_p13 = scmp.lt.s32.totalorder %s269_s6, %s269_s6 }
  0x1c   :  { %p276_p0 = por %p275_p13, %p274_p12 }
  0x1e   :  { %p277_p1 = pnand %p276_p0, %p270_p11 }
  0x20   :  { %280 = shalt.err (!%p277_p1)
}
  0x21   :  { %s311_s0 = smov 128   ;;  %s312_s7 = smov 8  }
  0x22   :  { %32 = dma.hbm_to_vmem [thread:$0]  %s384_s1, 2048, %s337_s15, [#allocation6], %s311_s0, %s311_s0, %s312_s7  }
  0x23   :  { %303 = dma.done.wait [#allocation3], 128  }
  0x24   :  { %304 = vsyncadd [#allocation3], 4294967168 }
  0x25   :  { %305 = dma.done.wait [#allocation6], 2048  }
  0x26   :  { %306 = vsyncadd [#allocation6], 4294965248  ;;  %v313_v0 = vmov 0.0|0.0   ;;  %vm314_vm0 = vmmov 0   ;;  %v315_v1 = vmov 0.0   ;;  %v42_v2 = vld [vmem:[#allocation5] sm:$0xff] }
  0x27   :  { %205 = vmatprep.subr.bf16.mxu0 %v313_v0  ;;  %202 = vmatprep.mubr.msk.f32.mxu0 %vm314_vm0, %v315_v1  ;;  %v43_v3 = vld [vmem:[#allocation5 + $0x8] sm:$0xff]  ;;  %v44_v4 = vld [vmem:[#allocation5 + $0x10] sm:$0xff]  ;;  %v45_v6 = vld [vmem:[#allocation5 + $0x18] sm:$0xff]  ;;  %s316_s11 = smov [#allocation7]  }
  0x28   :  { %v206_v5 = vpack.c.bf16 %v43_v3, %v42_v2  ;;  %v209_v7 = vpack.c.bf16 %v45_v6, %v44_v4  ;;  %v46_v8 = vld [vmem:[#allocation5 + $0x20] sm:$0xff]  ;;  %v47_v9 = vld [vmem:[#allocation5 + $0x28] sm:$0xff]  ;;  %v48_v11 = vld [vmem:[#allocation5 + $0x30] sm:$0xff]  ;;  %s142_s12 = sshll.u32 %s316_s11, 4  ;;  %s143_s12 = int_to_ptr.vmem [resolvable:$true] %s142_s12 }
  0x29   :  { %v212_v10 = vpack.c.bf16 %v47_v9, %v46_v8  ;;  %v49_v12 = vld [vmem:[#allocation5 + $0x38] sm:$0xff]  ;;  %v50_v14 = vld [vmem:[#allocation5 + $0x40] sm:$0xff]  ;;  %v51_v15 = vld [vmem:[#allocation5 + $0x48] sm:$0xff]  ;;  %s281_s13 = scalar_lea.vmem %s143_s12, 128  ;;  %p286_p3 = scmp.lt.s32.totalorder %s143_s12, %s143_s12 }
  0x2a   :  { %207 = vmatpush3.bf16.msra.mxu0 %v206_v5  ;;  %v215_v13 = vpack.c.bf16 %v49_v12, %v48_v11  ;;  %v218_v16 = vpack.c.bf16 %v51_v15, %v50_v14  ;;  %v52_v17 = vld [vmem:[#allocation5 + $0x50] sm:$0xff]  ;;  %v53_v18 = vld [vmem:[#allocation5 + $0x58] sm:$0xff]  ;;  %v54_v20 = vld [vmem:[#allocation5 + $0x60] sm:$0xff]  ;;  %p282_p2 = scmp.ne.s32.totalorder %s143_s12, %s281_s13  ;;  %p287_p4 = scmp.lt.s32.totalorder %s281_s13, %s281_s13 }
  0x2b   :  { %208 = vmatprep.subr.bf16.mxu0 %v313_v0  ;;  %v221_v19 = vpack.c.bf16 %v53_v18, %v52_v17  ;;  %v55_v21 = vld [vmem:[#allocation5 + $0x68] sm:$0xff]  ;;  %v56_v23 = vld [vmem:[#allocation5 + $0x70] sm:$0xff]  ;;  %v57_v24 = vld [vmem:[#allocation5 + $0x78] sm:$0xff] }
  0x2c   :  { %v224_v22 = vpack.c.bf16 %v55_v21, %v54_v20  ;;  %v227_v25 = vpack.c.bf16 %v57_v24, %v56_v23  ;;  %v41_v26 = vld [vmem:[#allocation2] sm:$0xff]  ;;  %p288_p5 = por %p287_p4, %p286_p3 }
  0x2d   :  { %v152_v27 = vld [vmem:[%s385_s2] ss:$0 sm:$0xff] }
  0x2e   :  { %210 = vmatpush3.bf16.msra.mxu0 %v209_v7  ;;  %p289_p6 = pnand %p288_p5, %p282_p2 }
  0x2f   :  { %211 = vmatprep.subr.bf16.mxu0 %v313_v0 }
  0x32   :  { %213 = vmatpush3.bf16.msra.mxu0 %v212_v10 }
  0x33   :  { %214 = vmatprep.subr.bf16.mxu0 %v313_v0 }
  0x36   :  { %216 = vmatpush3.bf16.msra.mxu0 %v215_v13 }
  0x37   :  { %217 = vmatprep.subr.bf16.mxu0 %v313_v0 }
  0x3a   :  { %219 = vmatpush3.bf16.msra.mxu0 %v218_v16 }
  0x3b   :  { %220 = vmatprep.subr.bf16.mxu0 %v313_v0 }
  0x3e   :  { %222 = vmatpush3.bf16.msra.mxu0 %v221_v19 }
  0x3f   :  { %223 = vmatprep.subr.bf16.mxu0 %v313_v0 }
  0x42   :  { %225 = vmatpush3.bf16.msra.mxu0 %v224_v22 }
  0x43   :  { %226 = vmatprep.subr.bf16.mxu0 %v313_v0 }
  0x46   :  { %228 = vmatpush3.bf16.msra.mxu0 %v227_v25 }
  0x49   :  { %203 = vmatmul.mubr.f32.vlgmr.msra.gmra.mrb[0].mxu0 %v41_v26 }
 0x11c   :  { %v131_v28 = vpop.f32.mrb[0].mxu0 }
 0x11d   :  { %v132_v29 = vadd.f32 %v152_v27, %v131_v28  ;;  %v204_v30 = vpop.f32.mrb[1].mxu0 }
 0x11f   :  { %135 = vst [vmem:[#allocation7] sm:$0xff] %v132_v29 }
 0x120   :  { %292 = shalt.err (!%p289_p6)
}
 0x121   :  { %s293_s16 = scalar_lea.hbm %s386_s3, 128 }
 0x122   :  { %p294_p7 = scmp.ne.s32.totalorder %s386_s3, %s293_s16  ;;  %p297_p8 = scmp.lt.u32.totalorder %s293_s16, %s386_s3 }
 0x124   :  { %p299_p9 = pnand %p297_p8, %p294_p7 }
 0x126   :  { %302 = shalt.err (!%p299_p9)
}
 0x127   :  { %145 = dma.vmem_to_hbm [thread:$0]  %s143_s12, 128, %s386_s3, [#allocation4]  }
 0x128   :  { %307 = dma.done.wait [#allocation4], 128  }
 0x129   :  { %308 = vsyncadd [#allocation4], 4294967168 }
 0x12a   :  { %149 = vsyncpa [#allocation3], 1 }
 0x12b   :  { %150 = vsyncpa [#allocation6], 1 }
 0x12c   :  { %151 = vsyncpa [#allocation4], 1 }

</bundles_post_ra>
